<compile_context>
chip_gen: v5e
topology: v5e:2x2
jax: 0.10.0
libtpu: 0.0.40
codegen_flags: <defaults>
</compile_context>

<pallas_src>
import functools
import math

import jax
import jax.numpy as jnp
import numpy as np
from jax.experimental import pallas as pl
from jax.experimental.pallas import tpu as pltpu


# ----------------------------------------------------------------------------
# Parameter construction (deterministic, mirrors sin_fr_layer.__init__)
# ----------------------------------------------------------------------------
def init_bases(in_features, high_freq_num, low_freq_num, phi_num, alpha):
    phi_set = np.array([2 * math.pi * i / phi_num for i in range(phi_num)])
    high_freq = np.array([i + 1 for i in range(high_freq_num)], dtype=np.float64)
    low_freq = np.array([(i + 1) / low_freq_num for i in range(low_freq_num)],
                        dtype=np.float64)
    if len(low_freq) != 0:
        T_max = 2 * math.pi / low_freq[0]
    else:
        T_max = 2 * math.pi / float(np.min(high_freq))
    points = np.linspace(-T_max / 2, T_max / 2, in_features)

    m = (high_freq_num + low_freq_num) * phi_num
    bases = np.empty((m, in_features), dtype=np.float32)
    i = 0
    for freq in low_freq:
        for phi in phi_set:
            bases[i, :] = np.cos(freq * points + phi)
            i += 1
    for freq in high_freq:
        for phi in phi_set:
            bases[i, :] = np.cos(freq * points + phi)
            i += 1
    return (alpha * bases).astype(np.float32)


def init_lamb(key, out_features, bases, omega_0):
    m = bases.shape[0]
    norms = np.linalg.norm(bases, ord=2, axis=1)          # (m,)
    bound = np.sqrt(6.0 / m) / norms / omega_0            # (m,)
    u = jax.random.uniform(key, (out_features, m), dtype=jnp.float32,
                           minval=-1.0, maxval=1.0)
    return u * jnp.asarray(bound, dtype=jnp.float32)[None, :]


# ----------------------------------------------------------------------------
# Pallas kernel:  t = x @ bases_T ; out = sin(omega0 * (t @ lamb_T + bias))
# ----------------------------------------------------------------------------
def sin_fr_kernel(x_ref, basesT_ref, lambT_ref, bias_ref, o_ref, *, omega_0):
    # (tb, K) @ (K, M) -> (tb, M)   -- MXU, contraction on lanes of x
    t = jnp.dot(x_ref[...], basesT_ref[...], preferred_element_type=jnp.float32)
    # (tb, M) @ (M, tn) -> (tb, tn) -- MXU, no transpose needed
    out = jnp.dot(t, lambT_ref[...], preferred_element_type=jnp.float32)
    # bias is (1, tn) and broadcasts on the VPU; sin goes to the EUP.
    o_ref[...] = jnp.sin(omega_0 * (out + bias_ref[...]))


def _round_up(v, mult):
    return ((v + mult - 1) // mult) * mult


def sin_fr_forward(x, lamb, bases, bias, omega_0=30.0, *, tb=256, tn=256):
    """x: (B, in_features) f32 -> (B, out_features) f32."""
    B, in_features = x.shape
    out_features, m = lamb.shape
    assert bases.shape == (m, in_features)
    assert bias.shape[0] == out_features

    # One-time layout glue in XLA: pre-transpose parameters so both in-kernel
    # matmuls have the contraction dim on the lane axis.
    bases_T = jnp.asarray(bases).T                 # (in, m)
    lamb_T = jnp.asarray(lamb).T                   # (m, out)
    bias_row = jnp.asarray(bias).reshape(1, out_features)

    # Lane-dense, (8,128)-aligned padding.  Zero padding is exact: padded
    # columns of bases_T produce zero t-columns and padded rows of lamb_T
    # contribute nothing; padded output columns/rows are sliced away.
    tb = min(tb, _round_up(B, 8))
    tn = min(tn, _round_up(out_features, 128))
    B_pad = _round_up(B, tb)
    N_pad = _round_up(out_features, tn)
    K_pad = _round_up(in_features, 128)
    M_pad = _round_up(m, 128)

    x_p = jnp.pad(x.astype(jnp.float32),
                  ((0, B_pad - B), (0, K_pad - in_features)))
    basesT_p = jnp.pad(bases_T, ((0, K_pad - in_features), (0, M_pad - m)))
    lambT_p = jnp.pad(lamb_T, ((0, M_pad - m), (0, N_pad - out_features)))
    bias_p = jnp.pad(bias_row, ((0, 0), (0, N_pad - out_features)))

    grid = (B_pad // tb, N_pad // tn)

    # VMEM budget: double-buffered input/output tiles + in-kernel f32 temps.
    # TODO(synk): add a K grid axis + VMEM accumulator (P3) if in_features/m
    # ever become large enough that (K_pad, M_pad) and (M_pad, tn) tiles do
    # not comfortably fit VMEM; not needed at these parameter counts.
    tile_bytes = 4 * (tb * K_pad + K_pad * M_pad + M_pad * tn + tn
                      + tb * tn + tb * M_pad)
    vmem_bytes = int(min(max(2 * tile_bytes + (1 << 20), 32 << 20), 64 << 20))

    kernel = functools.partial(sin_fr_kernel, omega_0=float(omega_0))
    out_p = pl.pallas_call(
        kernel,
        out_shape=jax.ShapeDtypeStruct((B_pad, N_pad), jnp.float32),
        grid_spec=pl.GridSpec(
            grid=grid,
            in_specs=[
                pl.BlockSpec((tb, K_pad), lambda i, j: (i, 0)),      # x tile
                pl.BlockSpec((K_pad, M_pad), lambda i, j: (0, 0)),   # bases_T
                pl.BlockSpec((M_pad, tn), lambda i, j: (0, j)),      # lamb_T cols
                pl.BlockSpec((1, tn), lambda i, j: (0, j)),          # bias cols
            ],
            out_specs=pl.BlockSpec((tb, tn), lambda i, j: (i, j)),
        ),
        compiler_params=pltpu.CompilerParams(
            dimension_semantics=("parallel", "parallel"),
            vmem_limit_bytes=vmem_bytes),
    )(x_p, basesT_p, lambT_p, bias_p)

    return out_p[:B, :out_features]


# ----------------------------------------------------------------------------
# Pure-JAX reference (mirrors the PyTorch forward exactly)
# ----------------------------------------------------------------------------
def sin_fr_reference(x, lamb, bases, bias, omega_0=30.0):
    weight = lamb @ bases                       # (out, in)
    out = x @ weight.T + bias.reshape(1, -1)    # (B, out)
    return jnp.sin(omega_0 * out)


if __name__ == "__main__":
    # Small, shape-consistent config.
    in_features = 32
    out_features = 32
    high_freq_num = 2
    low_freq_num = 2
    phi_num = 4
    alpha = 0.5
    omega_0 = 30.0
    B = 8

    key = jax.random.PRNGKey(0)
    k_x, k_lamb = jax.random.split(key)

    bases_np = init_bases(in_features, high_freq_num, low_freq_num, phi_num, alpha)
    bases = jnp.asarray(bases_np)                               # (m, in) frozen
    lamb = init_lamb(k_lamb, out_features, bases_np, omega_0)   # (out, m)
    bias = jnp.zeros((out_features, 1), dtype=jnp.float32)      # (out, 1) zeros

    x = jax.random.normal(k_x, (B, in_features), dtype=jnp.float32)

    out = sin_fr_forward(x, lamb, bases, bias, omega_0)
    out = jax.block_until_ready(out)

    ref = sin_fr_reference(x, lamb, bases, bias, omega_0)
    np.testing.assert_allclose(np.asarray(out), np.asarray(ref),
                               rtol=1e-5, atol=1e-5)
    print("KERNEL_OK")
</pallas_src>

<mosaic_0001>
module attributes {stable_mosaic.version = 11 : i64} {
  func.func @sin_fr_kernel(%arg0: i32, %arg1: i32, %arg2: memref<8x128xf32, #tpu.memory_space<vmem>>, %arg3: memref<128x128xf32, #tpu.memory_space<vmem>>, %arg4: memref<128x128xf32, #tpu.memory_space<vmem>>, %arg5: memref<1x128xf32, #tpu.memory_space<vmem>>, %arg6: memref<8x128xf32, #tpu.memory_space<vmem>>) attributes {dimension_semantics = [#tpu.dimension_semantics<parallel>, #tpu.dimension_semantics<parallel>], iteration_bounds = array<i64: 1, 1>, scalar_prefetch = 0 : i64, scratch_operands = 0 : i64, tpu.core_type = #tpu.core_type<tc>, window_params = [{transform_indices = @transform_0, window_bounds = array<i64: 8, 128>}, {pipeline_mode = #tpu.pipeline_mode<synchronous>, transform_indices = @transform_1, window_bounds = array<i64: 128, 128>}, {transform_indices = @transform_2, window_bounds = array<i64: 128, 128>}, {transform_indices = @transform_3, window_bounds = array<i64: 1, 128>}, {transform_indices = @transform_4, window_bounds = array<i64: 8, 128>}]} {
    %c0 = arith.constant 0 : index
    %c0_0 = arith.constant 0 : index
    %0 = vector.load %arg2[%c0, %c0_0] : memref<8x128xf32, #tpu.memory_space<vmem>>, vector<8x128xf32>
    %c0_1 = arith.constant 0 : index
    %c0_2 = arith.constant 0 : index
    %1 = vector.load %arg3[%c0_1, %c0_2] : memref<128x128xf32, #tpu.memory_space<vmem>>, vector<128x128xf32>
    %cst = arith.constant dense<0.000000e+00> : vector<8x128xf32>
    %2 = tpu.matmul %0, %1, %cst {dimension_numbers = #tpu.dot_dimension_numbers<[1], [0], [0], [1], [0, 0, 1, 1], [], []>} : vector<8x128xf32>, vector<128x128xf32>, vector<8x128xf32> -> vector<8x128xf32>
    %c0_3 = arith.constant 0 : index
    %c0_4 = arith.constant 0 : index
    %3 = vector.load %arg4[%c0_3, %c0_4] : memref<128x128xf32, #tpu.memory_space<vmem>>, vector<128x128xf32>
    %cst_5 = arith.constant dense<0.000000e+00> : vector<8x128xf32>
    %4 = tpu.matmul %2, %3, %cst_5 {dimension_numbers = #tpu.dot_dimension_numbers<[1], [0], [0], [1], [0, 0, 1, 1], [], []>} : vector<8x128xf32>, vector<128x128xf32>, vector<8x128xf32> -> vector<8x128xf32>
    %c0_6 = arith.constant 0 : index
    %c0_7 = arith.constant 0 : index
    %5 = vector.load %arg5[%c0_6, %c0_7] : memref<1x128xf32, #tpu.memory_space<vmem>>, vector<1x128xf32>
    %6 = vector.broadcast %5 : vector<1x128xf32> to vector<8x128xf32>
    %7 = arith.addf %4, %6 : vector<8x128xf32>
    %cst_8 = arith.constant 3.000000e+01 : f32
    %8 = vector.broadcast %cst_8 : f32 to vector<8x128xf32>
    %9 = arith.mulf %8, %7 : vector<8x128xf32>
    %10 = math.sin %9 : vector<8x128xf32>
    %c0_9 = arith.constant 0 : index
    %c0_10 = arith.constant 0 : index
    %11 = vector.load %arg6[%c0_9, %c0_10] : memref<8x128xf32, #tpu.memory_space<vmem>>, vector<8x128xf32>
    tpu.vector_store %arg6[%c0_9, %c0_10], %10 {strides = array<i32>} : memref<8x128xf32, #tpu.memory_space<vmem>>, vector<8x128xf32>,
    return
  }
  func.func @transform_0(%arg0: i32, %arg1: i32) -> (i32, i32) {
    %c0_i32 = arith.constant 0 : i32
    %c0_i32_0 = arith.constant 0 : i32
    return %arg0, %c0_i32 : i32, i32
  }
  func.func @transform_1(%arg0: i32, %arg1: i32) -> (i32, i32) {
    %c0_i32 = arith.constant 0 : i32
    %c0_i32_0 = arith.constant 0 : i32
    %c0_i32_1 = arith.constant 0 : i32
    return %c0_i32, %c0_i32_0 : i32, i32
  }
  func.func @transform_2(%arg0: i32, %arg1: i32) -> (i32, i32) {
    %c0_i32 = arith.constant 0 : i32
    %c0_i32_0 = arith.constant 0 : i32
    return %c0_i32, %arg1 : i32, i32
  }
  func.func @transform_3(%arg0: i32, %arg1: i32) -> (i32, i32) {
    %c0_i32 = arith.constant 0 : i32
    %c0_i32_0 = arith.constant 0 : i32
    return %c0_i32, %arg1 : i32, i32
  }
  func.func @transform_4(%arg0: i32, %arg1: i32) -> (i32, i32) {
    %c0_i32 = arith.constant 0 : i32
    return %arg0, %arg1 : i32, i32
  }
}

</mosaic_0001>

<bundles_post_ra>
// kernel: tpu_custom_call.1
= control target key start
LH: loop header
LB: loop body
LE: loop exit
PB: predicated region body
PF: predicated region fallthrough
CT: control target
= control target key end

     0   :  { %9 = vsyncpa [#allocation3], 0  ;;  %s543_s0 = inlined_call_operand.hbm [shape: f32[8,128], index: 0, kind: input, shape index: {}]   ;;  %s544_s1 = inlined_call_operand.hbm [shape: f32[128,128], index: 1, kind: input, shape index: {}]   ;;  %s545_s2 = inlined_call_operand.hbm [shape: f32[128,128], index: 2, kind: input, shape index: {}]   ;;  %s546_s3 = inlined_call_operand.vmem [shape: f32[1,128], index: 3, kind: input, shape index: {}]   ;;  %s547_s4 = inlined_call_operand.hbm [shape: f32[8,128], index: 4, kind: output, shape index: {}]  }
   0x1   :  { %10 = vsyncpa [#allocation6], 0  ;;  %s27_s17 = sshll.u32 %s544_s1, 4  ;;  %s28_s17 = int_to_ptr.hbm [resolvable:$true] %s27_s17 }
   0x2   :  { %11 = vsyncpa [#allocation4], 0  ;;  %s434_s18 = smov [#allocation5]   ;;  %s17_s22 = sshll.u32 %s543_s0, 4  ;;  %s18_s22 = int_to_ptr.hbm [resolvable:$true] %s17_s22 }
   0x3   :  { %s29_s19 = sshll.u32 %s434_s18, 4  ;;  %s435_s23 = smov 128   ;;  %s30_s19 = int_to_ptr.vmem [resolvable:$true] %s29_s19 }
   0x4   :  { %s436_s24 = smov 8   ;;  %s437_s25 = smov [#allocation2]  }
   0x5   :  { %35 = dma.hbm_to_vmem [thread:$0]  %s28_s17, 2048, %s30_s19, [#allocation6], %s435_s23, %s435_s23, %s436_s24  }
   0x6   :  { %s19_s26 = sshll.u32 %s437_s25, 4  ;;  %s40_s29 = sshll.u32 %s545_s2, 4  ;;  %s20_s26 = int_to_ptr.vmem [resolvable:$true] %s19_s26  ;;  %s41_s29 = int_to_ptr.hbm [resolvable:$true] %s40_s29 }
   0x7   :  { %22 = dma.hbm_to_vmem [thread:$0]  %s18_s22, 128, %s20_s26, [#allocation3]  }
   0x8   :  { %s438_s1 = smov [#allocation7]  }
   0x9   :  { %s42_s30 = sshll.u32 %s438_s1, 4  ;;  %s43_s30 = int_to_ptr.vmem [resolvable:$true] %s42_s30 }
   0xa   :  { %48 = dma.hbm_to_vmem [thread:$0]  %s41_s29, 2048, %s43_s30, [#allocation6], %s435_s23, %s435_s23, %s436_s24  }
   0xb   :  { %428 = dma.done.wait [#allocation3], 128  }
   0xc   :  { %429 = vsyncadd [#allocation3], 4294967168 }
   0xd   :  { %430 = dma.done.wait [#allocation6], 4096  }
   0xe   :  { %431 = vsyncadd [#allocation6], 4294963200  ;;  %v79_v0 = vld [vmem:[#allocation5 + $0x78] sm:$0xff]  ;;  %v78_v1 = vld [vmem:[#allocation5 + $0x70] sm:$0xff]  ;;  %v439_v49 = vmov 683565275  }
   0xf   :  { %80 = vmatpush.msra.mxu0 %v79_v0  ;;  %v77_v2 = vld [vmem:[#allocation5 + $0x68] sm:$0xff]  ;;  %v76_v3 = vld [vmem:[#allocation5 + $0x60] sm:$0xff]  ;;  %v115_v4 = vld [vmem:[#allocation7 + $0x78] sm:$0xff]  ;;  %v440_v51 = vmov 2475754826   ;;  %s304_s8 = sshll.u32 %s547_s4, 4  ;;  %s305_s8 = int_to_ptr.hbm [resolvable:$true] %s304_s8 }
  0x10   :  { %v75_v5 = vld [vmem:[#allocation5 + $0x58] sm:$0xff]  ;;  %120 = vmatpush.msra.mxu1 %v115_v4  ;;  %v114_v6 = vld [vmem:[#allocation7 + $0x70] sm:$0xff]  ;;  %v113_v7 = vld [vmem:[#allocation7 + $0x68] sm:$0xff]  ;;  %v441_v54 = vmov 2131351028  }
  0x11   :  { %81 = vmatpush.msra.mxu0 %v78_v1  ;;  %v74_v8 = vld [vmem:[#allocation5 + $0x50] sm:$0xff]  ;;  %v112_v9 = vld [vmem:[#allocation7 + $0x60] sm:$0xff]  ;;  %v73_v10 = vld [vmem:[#allocation5 + $0x48] sm:$0xff]  ;;  %v442_v57 = vmov 2102212464  }
  0x12   :  { %121 = vmatpush.msra.mxu1 %v114_v6  ;;  %v111_v11 = vld [vmem:[#allocation7 + $0x58] sm:$0xff]  ;;  %v72_v12 = vld [vmem:[#allocation5 + $0x40] sm:$0xff]  ;;  %v110_v13 = vld [vmem:[#allocation7 + $0x50] sm:$0xff]  ;;  %v443_v60 = vmov 920167782  }
  0x13   :  { %82 = vmatpush.msra.mxu0 %v77_v2  ;;  %v71_v14 = vld [vmem:[#allocation5 + $0x38] sm:$0xff]  ;;  %v109_v15 = vld [vmem:[#allocation7 + $0x48] sm:$0xff]  ;;  %v70_v16 = vld [vmem:[#allocation5 + $0x30] sm:$0xff]  ;;  %v444_v63 = vmov 1326507024  }
  0x14   :  { %122 = vmatpush.msra.mxu1 %v113_v7  ;;  %v108_v17 = vld [vmem:[#allocation7 + $0x40] sm:$0xff]  ;;  %v69_v18 = vld [vmem:[#allocation5 + $0x28] sm:$0xff]  ;;  %v107_v19 = vld [vmem:[#allocation7 + $0x38] sm:$0xff] }
  0x15   :  { %83 = vmatpush.msra.mxu0 %v76_v3  ;;  %v68_v20 = vld [vmem:[#allocation5 + $0x20] sm:$0xff]  ;;  %v106_v21 = vld [vmem:[#allocation7 + $0x30] sm:$0xff]  ;;  %v67_v22 = vld [vmem:[#allocation5 + $0x18] sm:$0xff] }
  0x16   :  { %123 = vmatpush.msra.mxu1 %v112_v9  ;;  %v105_v23 = vld [vmem:[#allocation7 + $0x28] sm:$0xff]  ;;  %v66_v24 = vld [vmem:[#allocation5 + $0x10] sm:$0xff]  ;;  %v104_v25 = vld [vmem:[#allocation7 + $0x20] sm:$0xff] }
  0x17   :  { %84 = vmatpush.msra.mxu0 %v75_v5  ;;  %v65_v26 = vld [vmem:[#allocation5 + $0x8] sm:$0xff]  ;;  %v103_v27 = vld [vmem:[#allocation7 + $0x18] sm:$0xff]  ;;  %v64_v28 = vld [vmem:[#allocation5] sm:$0xff] }
  0x18   :  { %124 = vmatpush.msra.mxu1 %v111_v11  ;;  %v63_v29 = vld [vmem:[#allocation2] sm:$0xff]  ;;  %v102_v30 = vld [vmem:[#allocation7 + $0x10] sm:$0xff]  ;;  %v101_v31 = vld [vmem:[#allocation7 + $0x8] sm:$0xff] }
  0x19   :  { %85 = vmatpush.msra.mxu0 %v74_v8  ;;  %v100_v32 = vld [vmem:[#allocation7] sm:$0xff]  ;;  %v331_v34 = vld [vmem:[%s546_s3] ss:$0 sm:$0xff]  ;;  %s446_s3 = smov [#allocation8]  }
  0x1a   :  { %125 = vmatpush.msra.mxu1 %v110_v13  ;;  %s302_s5 = sshll.u32 %s446_s3, 4  ;;  %s303_s5 = int_to_ptr.vmem [resolvable:$true] %s302_s5 }
  0x1b   :  { %86 = vmatpush.msra.mxu0 %v73_v10 }
  0x1c   :  { %126 = vmatpush.msra.mxu1 %v109_v15 }
  0x1d   :  { %87 = vmatpush.msra.mxu0 %v72_v12 }
  0x1e   :  { %127 = vmatpush.msra.mxu1 %v108_v17 }
  0x1f   :  { %88 = vmatpush.msra.mxu0 %v71_v14 }
  0x20   :  { %128 = vmatpush.msra.mxu1 %v107_v19 }
  0x21   :  { %89 = vmatpush.msra.mxu0 %v70_v16 }
  0x22   :  { %129 = vmatpush.msra.mxu1 %v106_v21 }
  0x23   :  { %90 = vmatpush.msra.mxu0 %v69_v18 }
  0x24   :  { %130 = vmatpush.msra.mxu1 %v105_v23 }
  0x25   :  { %91 = vmatpush.msra.mxu0 %v68_v20 }
  0x26   :  { %131 = vmatpush.msra.mxu1 %v104_v25 }
  0x27   :  { %92 = vmatpush.msra.mxu0 %v67_v22 }
  0x28   :  { %132 = vmatpush.msra.mxu1 %v103_v27 }
  0x29   :  { %93 = vmatpush.msra.mxu0 %v66_v24 }
  0x2a   :  { %133 = vmatpush.msra.mxu1 %v102_v30 }
  0x2b   :  { %94 = vmatpush.msra.mxu0 %v65_v26 }
  0x2c   :  { %134 = vmatpush.msra.mxu1 %v101_v31 }
  0x2d   :  { %95 = vmatpush.msra.mxu0 %v64_v28 }
  0x2e   :  { %96 = vmatmul.f32.vlgmr.msra.gmra.mxu0 %v63_v29  ;;  %135 = vmatpush.msra.mxu1 %v100_v32 }
  0xab   :  { %v97_v33 = vpop.f32.mrf.mxu0 }
  0xac   :  { %136 = vmatmul.f32.vlgmr.msra.gmra.mxu1 %v97_v33  ;;  %v445_v33 = vmov 0  }
 0x129   :  { %v137_v35 = vpop.f32.mrf.mxu1 }
 0x12a   :  { %v138_v36 = vadd.f32 %v331_v34, %v137_v35 }
 0x12c   :  { %v484_v37 = vmul.f32 30.0, %v138_v36 }
 0x12e   :  { %v144_v38 = vand.u32 2139095040, %v484_v37  ;;  %v141_v41 = vand.u32 2147483647, %v484_v37  ;;  %vm143_vm12 = vcmp.lt.s32.totalorder %v484_v37, 0 }
 0x130   :  { %v145_v39 = vshrl.u32 %v144_v38, 23  ;;  %v148_v43 = vand.u32 8388607, %v141_v41  ;;  %vm142_vm13 = vcmp.le.f32.partialorder %v141_v41, 0.7853982 }
 0x132   :  { %v315_v40 = vadd.s32 4294967169, %v145_v39  ;;  %v149_v47 = vor.u32 8388608, %v148_v43 }
 0x134   :  { %v151_v42 = vadd.s32 1, %v315_v40  ;;  %v501_v6 = vshll.u32 %v149_v47, 8 }
 0x136   :  { %vm152_vm0 = vcmp.gt.s32.totalorder %v151_v42, 0  ;;  %v190_v15 = vand.u32 65535, %v501_v6  ;;  %v191_v16 = vshrl.u32 %v501_v6, 16 }
 0x137   :  { %v153_v44 = vsel %vm152_vm0, %v151_v42, 0 }
 0x138   :  { %v155_v45 = vand.u32 31, %v153_v44  ;;  %v492_v48 = vshrl.u32 %v153_v44, 5 }
 0x13a   :  { %v490_v46 = vsub.s32 32, %v155_v45  ;;  %v158_v50 = vshll.u32 %v439_v49, %v155_v45  ;;  %v161_v52 = vshll.u32 %v440_v51, %v155_v45  ;;  %v164_v56 = vshll.u32 %v441_v54, %v155_v45 }
 0x13b   :  { %v167_v59 = vshll.u32 %v442_v57, %v155_v45  ;;  %v170_v62 = vshll.u32 %v443_v60, %v155_v45  ;;  %vm173_vm1 = vcmp.lt.s32.totalorder %v492_v48, 1  ;;  %vm176_vm2 = vcmp.lt.s32.totalorder %v492_v48, 4 }
 0x13c   :  { %v159_v53 = vshrl.u32 %v440_v51, %v490_v46  ;;  %v162_v55 = vshrl.u32 %v441_v54, %v490_v46  ;;  %v165_v58 = vshrl.u32 %v442_v57, %v490_v46  ;;  %v168_v61 = vshrl.u32 %v443_v60, %v490_v46 }
 0x13d   :  { %v171_v0 = vshrl.u32 %v444_v63, %v490_v46  ;;  %vm175_vm3 = vcmp.lt.s32.totalorder %v492_v48, 3  ;;  %vm174_vm4 = vcmp.lt.s32.totalorder %v492_v48, 2  ;;  %v157_v44 = vshrl.u32 %v439_v49, %v490_v46 }
 0x13e   :  { %v160_v1 = vor.u32 %v159_v53, %v158_v50  ;;  %v163_v2 = vor.u32 %v162_v55, %v161_v52  ;;  %v166_v3 = vor.u32 %v165_v58, %v164_v56  ;;  %v169_v4 = vor.u32 %v168_v61, %v167_v59 }
 0x13f   :  { %v172_v5 = vor.u32 %v171_v0, %v170_v62 }
 0x140   :  { %v181_v7 = vsel %vm173_vm1, %v160_v1, %v163_v2  ;;  %v185_v8 = vsel %vm173_vm1, %v163_v2, %v166_v3  ;;  %v182_v9 = vsel %vm176_vm2, %v169_v4, 920167782  ;;  %v178_v40 = vsel %vm176_vm2, %v166_v3, 2102212464 }
 0x141   :  { %v186_v10 = vsel %vm176_vm2, %v172_v5, 1326507024  ;;  %v183_v11 = vsel %vm175_vm3, %v166_v3, %v182_v9  ;;  %v177_v53 = vsel %vm173_vm1, %v157_v44, %v160_v1  ;;  %v179_v54 = vsel %vm175_vm3, %v163_v2, %v178_v40 }
 0x142   :  { %v187_v12 = vsel %vm175_vm3, %v169_v4, %v186_v10  ;;  %v184_v13 = vsel %vm174_vm4, %v181_v7, %v183_v11  ;;  %v180_v46 = vsel %vm174_vm4, %v177_v53, %v179_v54  ;;  %vm284_vm1 = vweird.f32 %v484_v37 }
 0x143   :  { %v188_v14 = vsel %vm174_vm4, %v185_v8, %v187_v12  ;;  %v214_v19 = vand.u32 65535, %v184_v13  ;;  %v215_v20 = vshrl.u32 %v184_v13, 16  ;;  %v234_v62 = vmul.u32 %v501_v6, %v180_v46 }
 0x144   :  { %v192_v17 = vand.u32 65535, %v188_v14  ;;  %v193_v18 = vshrl.u32 %v188_v14, 16 }
 0x145   :  { %v217_v23 = vmul.u32 %v215_v20, %v190_v15  ;;  %v218_v24 = vmul.u32 %v214_v19, %v191_v16  ;;  %v216_v28 = vmul.u32 %v214_v19, %v190_v15  ;;  %v219_v32 = vmul.u32 %v215_v20, %v191_v16 }
 0x146   :  { %v195_v21 = vmul.u32 %v193_v18, %v190_v15  ;;  %v196_v22 = vmul.u32 %v192_v17, %v191_v16  ;;  %v194_v25 = vmul.u32 %v192_v17, %v190_v15  ;;  %v197_v27 = vmul.u32 %v193_v18, %v191_v16 }
 0x147   :  { %v220_v29 = vshll.u32 %v217_v23, 16  ;;  %v222_v35 = vshll.u32 %v218_v24, 16  ;;  %v221_v51 = vshrl.u32 %v217_v23, 16  ;;  %v223_v57 = vshrl.u32 %v218_v24, 16 }
 0x148   :  { %v198_v26 = vshll.u32 %v195_v21, 16  ;;  %v200_v30 = vshll.u32 %v196_v22, 16  ;;  %v199_v45 = vshrl.u32 %v195_v21, 16  ;;  %v201_v55 = vshrl.u32 %v196_v22, 16 }
 0x149   :  { %vm224_vm6 = vc.u32 %v216_v28, %v220_v29  ;;  %v226_v36 = vadd.s32 %v220_v29, %v216_v28 }
 0x14a   :  { %vm202_vm5 = vc.u32 %v194_v25, %v198_v26  ;;  %v204_v31 = vadd.s32 %v198_v26, %v194_v25  ;;  %v225_v39 = vsel %vm224_vm6, 1, %v445_v33 }
 0x14b   :  { %v203_v34 = vsel %vm202_vm5, 1, %v445_v33  ;;  %v227_v43 = vadd.s32 %v225_v39, %v219_v32  ;;  %vm228_vm8 = vc.u32 %v226_v36, %v222_v35  ;;  %v230_v60 = vadd.s32 %v226_v36, %v222_v35 }
 0x14c   :  { %v205_v38 = vadd.s32 %v203_v34, %v197_v27  ;;  %vm206_vm7 = vc.u32 %v204_v31, %v200_v30  ;;  %v229_v50 = vsel %vm228_vm8, 1, %v445_v33 }
 0x14d   :  { %v207_v42 = vsel %vm206_vm7, 1, %v445_v33  ;;  %v231_v52 = vadd.s32 %v229_v50, %v227_v43 }
 0x14e   :  { %v209_v47 = vadd.s32 %v207_v42, %v205_v38 }
 0x14f   :  { %v232_v58 = vadd.s32 %v231_v52, %v221_v51 }
 0x150   :  { %v210_v56 = vadd.s32 %v209_v47, %v199_v45 }
 0x151   :  { %v233_v49 = vadd.s32 %v232_v58, %v223_v57 }
 0x152   :  { %v211_v59 = vadd.s32 %v210_v56, %v201_v55 }
 0x153   :  { %v237_v61 = vadd.s32 1, %v233_v49 }
 0x154   :  { %vm236_vm9 = vc.u32 %v211_v59, %v230_v60  ;;  %v235_v48 = vadd.s32 %v230_v60, %v211_v59 }
 0x155   :  { %v238_v63 = vsel %vm236_vm9, %v237_v61, %v233_v49 }
 0x156   :  { %v239_v0 = vadd.s32 %v238_v63, %v234_v62 }
 0x158   :  { %v240_v1 = vadd.s32 536870912, %v239_v0 }
 0x15a   :  { %v241_v3 = vshrl.u32 %v240_v1, 30 }
 0x15c   :  { %v242_v4 = vshll.u32 %v241_v3, 30  ;;  %v265_v23 = vsub.s32 4, %v241_v3 }
 0x15e   :  { %v243_v2 = vsub.s32 %v239_v0, %v242_v4  ;;  %v266_v28 = vsel %vm143_vm12, %v265_v23, %v241_v3 }
 0x15f   :  { %v268_v31 = vsel %vm142_vm13, 0, %v266_v28 }
 0x160   :  { %vm244_vm10 = vcmp.lt.s32.totalorder %v243_v2, 0  ;;  %v245_v5 = vsub.s32 0, %v243_v2  ;;  %v285_v36 = vadd.s32 3, %v268_v31 }
 0x162   :  { %v246_v7 = vsel %vm244_vm10, %v245_v5, %v243_v2  ;;  %v286_v42 = vand.u32 3, %v285_v36 }
 0x163   :  { %v247_v8 = vclz %v246_v7 }
 0x164   :  { %vm288_vm14 = vcmp.eq.s32.totalorder %v286_v42, 0  ;;  %vm291_vm15 = vcmp.eq.s32.totalorder %v286_v42, 2  ;;  %vm287_vm0 = vcmp.lt.s32.totalorder %v286_v42, 2 }
 0x165   :  { %v316_v9 = vadd.s32 4294967294, %v247_v8 }
 0x167   :  { %vm317_vm11 = vcmp.lt.s32.totalorder %v316_v9, 0 }
 0x168   :  { %v250_v10 = vsel %vm317_vm11, 0, %v316_v9 }
 0x169   :  { %v251_v11 = vsub.s32 32, %v250_v10  ;;  %v255_v12 = vsub.s32 4294967266, %v250_v10  ;;  %v252_v13 = vshll.u32 %v243_v2, %v250_v10 }
 0x16b   :  { %v253_v14 = vshrl.u32 %v235_v48, %v251_v11  ;;  %v256_v15 = vadd.s32 127, %v255_v12 }
 0x16d   :  { %v254_v6 = vor.u32 %v253_v14, %v252_v13  ;;  %v257_v16 = vshll.u32 %v256_v15, 23 }
 0x16f   :  { %v258_v17 = vor.u32 4788187, %v257_v16  ;;  %v261_v19 = vcvt.s32.f32 %v254_v6 }
 0x171   :  { %v259_v18 = vand.u32 2147483647, %v258_v17 }
 0x173   :  { %v262_v20 = vmul.f32 %v261_v19, %v259_v18 }
 0x175   :  { %v263_v21 = vxor.u32 2147483648, %v262_v20 }
 0x177   :  { %v264_v22 = vsel %vm143_vm12, %v263_v21, %v262_v20 }
 0x178   :  { %v267_v24 = vsel %vm142_vm13, %v484_v37, %v264_v22 }
 0x179   :  { %v269_v25 = vmul.f32 %v267_v24, %v267_v24 }
 0x17b   :  { %v270_v26 = vmul.f32 -0.001358992, %v269_v25  ;;  %v277_v27 = vmul.f32 -0.00019511016, %v269_v25 }
 0x17d   :  { %v271_v29 = vadd.f32 0.041655596, %v270_v26  ;;  %v278_v30 = vadd.f32 0.008332121, %v277_v27 }
 0x17f   :  { %v272_v32 = vmul.f32 %v271_v29, %v269_v25  ;;  %v279_v33 = vmul.f32 %v278_v30, %v269_v25 }
 0x181   :  { %v273_v34 = vadd.f32 -0.4999988, %v272_v32  ;;  %v280_v35 = vadd.f32 -0.16666654, %v279_v33 }
 0x183   :  { %v274_v38 = vmul.f32 %v273_v34, %v269_v25  ;;  %v281_v39 = vmul.f32 %v280_v35, %v269_v25 }
 0x185   :  { %v275_v40 = vadd.f32 1.0, %v274_v38  ;;  %v282_v41 = vadd.f32 1.0, %v281_v39 }
 0x187   :  { %v283_v43 = vmul.f32 %v282_v41, %v267_v24  ;;  %v292_v44 = vxor.u32 2147483648, %v275_v40 }
 0x189   :  { %v289_v45 = vxor.u32 2147483648, %v283_v43  ;;  %v293_v50 = vsel %vm291_vm15, %v292_v44, %v283_v43 }
 0x18b   :  { %v290_v47 = vsel %vm288_vm14, %v275_v40, %v289_v45 }
 0x18c   :  { %v294_v51 = vsel %vm287_vm0, %v290_v47, %v293_v50 }
 0x18d   :  { %v295_v52 = vsel %vm284_vm1, nan, %v294_v51 }
 0x18e   :  { %296 = vst [vmem:[#allocation8] sm:$0xff] %v295_v52 }
 0x18f   :  { %307 = dma.vmem_to_hbm [thread:$0]  %s303_s5, 128, %s305_s8, [#allocation4]  }
 0x190   :  { %432 = dma.done.wait [#allocation4], 128  }
 0x191   :  { %433 = vsyncadd [#allocation4], 4294967168 }
 0x192   :  { %312 = vsyncpa [#allocation3], 1 }
 0x193   :  { %313 = vsyncpa [#allocation6], 1 }
 0x194   :  { %314 = vsyncpa [#allocation4], 1 }

</bundles_post_ra>
